<compile_context>
chip_gen: v7x
topology: tpu7x:2x2x1
jax: 0.10.0
libtpu: 0.0.40
codegen_flags: <defaults>
</compile_context>

<pallas_src>
import jax
import jax.numpy as jnp
from jax import lax
from jax.experimental import pallas as pl
from jax.experimental.pallas import tpu as pltpu

EPS = 1e-5  # PyTorch BatchNorm2d default


def residual_block_kernel(x_ref, w1_ref, s1_ref, b1_ref, w2_ref, s2_ref, b2_ref, o_ref):
    # x_ref: (1, C, HWt)  one batch element, channel-major, lane-dense spatial axis
    # w*:    (C, C)       1x1 conv weight (Cout, Cin)
    # s*:    (C, 1)       folded BatchNorm scale = gamma / sqrt(var + eps)
    # b*:    (C, 1)       folded bias           = conv_b * scale + (beta - mean * scale)
    C = x_ref.shape[1]

    def channel_mix(h, w):
        # out[co, hw] = sum_ci w[co, ci] * h[ci, hw]
        if C <= 32:
            # At tiny C the MXU contraction (K=C of 128/256) is ~3-6% utilized and
            # dominated by push/pop latency -> do it on the VPU as C broadcast-FMAs.
            acc = w[:, 0:1] * h[0:1, :]
            for ci in range(1, C):
                acc = acc + w[:, ci:ci + 1] * h[ci:ci + 1, :]
            return acc
        # Realistic C (>=128): single MXU matmul, f32 accumulate.
        # (On v6e/v7x casting operands to bf16 here is a further win.)
        return jnp.dot(w, h, preferred_element_type=jnp.float32)

    x = x_ref[0]                                    # (C, HWt)
    h = channel_mix(x, w1_ref[...])                 # conv1 (1x1)
    h = h * s1_ref[...] + b1_ref[...]               # conv1 bias + bn1 (folded)
    h = jnp.maximum(h, 0.0)                         # ReLU
    h = channel_mix(h, w2_ref[...])                 # conv2 (1x1)
    h = h * s2_ref[...] + b2_ref[...]               # conv2 bias + bn2 (folded)
    # residual add + final ReLU; re-read x from VMEM rather than keeping it live.
    o_ref[0] = jnp.maximum(h + x_ref[0], 0.0).astype(o_ref.dtype)


def _choose_hw_tile(hw, c, budget_bytes=8 << 20):
    """Largest HW tile such that double-buffered f32 in+out blocks fit the budget."""
    t = hw
    # bytes per grid step ~= 2 (in+out) * 2 (double buffer) * c * t * 4
    while t % 2 == 0 and (t // 2) % 128 == 0 and 16 * c * t > budget_bytes:
        t //= 2
    return t


def residual_block_forward(x_nchw,
                           conv1_w, conv1_b, bn1_gamma, bn1_beta, bn1_mean, bn1_var,
                           conv2_w, conv2_b, bn2_gamma, bn2_beta, bn2_mean, bn2_var):
    """x: (N,C,H,W); conv*_w: (C,C,1,1); conv*_b / bn* params: (C,)."""
    N, C, H, W = x_nchw.shape
    HW = H * W
    assert conv1_w.shape[0] == conv1_w.shape[1] == C  # identity residual needs Cin == Cout

    x = x_nchw.reshape(N, C, HW)                    # free relayout, no transpose

    w1 = conv1_w.reshape(C, C).astype(jnp.float32)
    w2 = conv2_w.reshape(C, C).astype(jnp.float32)
    scale1 = bn1_gamma * lax.rsqrt(bn1_var + EPS)   # (C,)
    shift1 = bn1_beta - bn1_mean * scale1
    scale2 = bn2_gamma * lax.rsqrt(bn2_var + EPS)
    shift2 = bn2_beta - bn2_mean * scale2
    s1 = scale1.reshape(C, 1)
    b1 = (conv1_b * scale1 + shift1).reshape(C, 1)
    s2 = scale2.reshape(C, 1)
    b2 = (conv2_b * scale2 + shift2).reshape(C, 1)

    hwt = _choose_hw_tile(HW, C)
    grid = (N, HW // hwt)

    out = pl.pallas_call(
        residual_block_kernel,
        out_shape=jax.ShapeDtypeStruct((N, C, HW), jnp.float32),
        grid_spec=pltpu.PrefetchScalarGridSpec(
            num_scalar_prefetch=0,
            grid=grid,
            in_specs=[
                pl.BlockSpec((1, C, hwt), lambda n, h: (n, 0, h)),
                pl.BlockSpec((C, C), lambda n, h: (0, 0)),
                pl.BlockSpec((C, 1), lambda n, h: (0, 0)),
                pl.BlockSpec((C, 1), lambda n, h: (0, 0)),
                pl.BlockSpec((C, C), lambda n, h: (0, 0)),
                pl.BlockSpec((C, 1), lambda n, h: (0, 0)),
                pl.BlockSpec((C, 1), lambda n, h: (0, 0)),
            ],
            out_specs=pl.BlockSpec((1, C, hwt), lambda n, h: (n, 0, h)),
        ),
        compiler_params=pltpu.CompilerParams(
            dimension_semantics=("parallel", "parallel"),
            vmem_limit_bytes=32 * 1024 * 1024,
        ),
    )(x, w1, s1, b1, w2, s2, b2)

    return out.reshape(N, C, H, W)                  # free, still NCHW


def _reference(x, conv1_w, conv1_b, g1, be1, m1, v1, conv2_w, conv2_b, g2, be2, m2, v2):
    """Pure-JAX reference of the same forward (eval-mode BN), NCHW."""
    C = x.shape[1]

    def conv1x1(t, w, b):
        return jnp.einsum("oi,nihw->nohw", w.reshape(C, C), t) + b.reshape(1, C, 1, 1)

    def bn(t, g, be, m, v):
        return (t - m.reshape(1, C, 1, 1)) * (
            g.reshape(1, C, 1, 1) / jnp.sqrt(v.reshape(1, C, 1, 1) + EPS)
        ) + be.reshape(1, C, 1, 1)

    h = jax.nn.relu(bn(conv1x1(x, conv1_w, conv1_b), g1, be1, m1, v1))
    h = bn(conv1x1(h, conv2_w, conv2_b), g2, be2, m2, v2)
    return jax.nn.relu(h + x)


if __name__ == "__main__":
    N, C, H, W = 2, 8, 16, 16
    key = jax.random.PRNGKey(0)
    ks = jax.random.split(key, 13)

    x = jax.random.normal(ks[0], (N, C, H, W), dtype=jnp.float32)
    conv1_w = jax.random.normal(ks[1], (C, C, 1, 1), dtype=jnp.float32) * 0.2
    conv1_b = jax.random.normal(ks[2], (C,), dtype=jnp.float32) * 0.1
    bn1_gamma = 1.0 + 0.2 * jax.random.normal(ks[3], (C,), dtype=jnp.float32)
    bn1_beta = 0.1 * jax.random.normal(ks[4], (C,), dtype=jnp.float32)
    bn1_mean = 0.1 * jax.random.normal(ks[5], (C,), dtype=jnp.float32)
    bn1_var = jax.random.uniform(ks[6], (C,), dtype=jnp.float32, minval=0.5, maxval=1.5)
    conv2_w = jax.random.normal(ks[7], (C, C, 1, 1), dtype=jnp.float32) * 0.2
    conv2_b = jax.random.normal(ks[8], (C,), dtype=jnp.float32) * 0.1
    bn2_gamma = 1.0 + 0.2 * jax.random.normal(ks[9], (C,), dtype=jnp.float32)
    bn2_beta = 0.1 * jax.random.normal(ks[10], (C,), dtype=jnp.float32)
    bn2_mean = 0.1 * jax.random.normal(ks[11], (C,), dtype=jnp.float32)
    bn2_var = jax.random.uniform(ks[12], (C,), dtype=jnp.float32, minval=0.5, maxval=1.5)

    out = residual_block_forward(
        x, conv1_w, conv1_b, bn1_gamma, bn1_beta, bn1_mean, bn1_var,
        conv2_w, conv2_b, bn2_gamma, bn2_beta, bn2_mean, bn2_var)
    out = jax.block_until_ready(out)

    ref = _reference(
        x, conv1_w, conv1_b, bn1_gamma, bn1_beta, bn1_mean, bn1_var,
        conv2_w, conv2_b, bn2_gamma, bn2_beta, bn2_mean, bn2_var)

    assert out.shape == (N, C, H, W)
    assert jnp.allclose(out, ref, atol=1e-4, rtol=1e-4), float(jnp.max(jnp.abs(out - ref)))

    print("KERNEL_OK")
</pallas_src>

<mosaic_0001>
module attributes {stable_mosaic.version = 11 : i64} {
  func.func @residual_block_kernel(%arg0: i32, %arg1: i32, %arg2: memref<1x8x256xf32, #tpu.memory_space<vmem>>, %arg3: memref<8x8xf32, #tpu.memory_space<vmem>>, %arg4: memref<8x1xf32, #tpu.memory_space<vmem>>, %arg5: memref<8x1xf32, #tpu.memory_space<vmem>>, %arg6: memref<8x8xf32, #tpu.memory_space<vmem>>, %arg7: memref<8x1xf32, #tpu.memory_space<vmem>>, %arg8: memref<8x1xf32, #tpu.memory_space<vmem>>, %arg9: memref<1x8x256xf32, #tpu.memory_space<vmem>>) attributes {dimension_semantics = [#tpu.dimension_semantics<parallel>, #tpu.dimension_semantics<parallel>], iteration_bounds = array<i64: 2, 1>, scalar_prefetch = 0 : i64, scratch_operands = 0 : i64, tpu.core_type = #tpu.core_type<tc>, window_params = [{transform_indices = @transform_0, window_bounds = array<i64: 1, 8, 256>}, {pipeline_mode = #tpu.pipeline_mode<synchronous>, transform_indices = @transform_1, window_bounds = array<i64: 8, 8>}, {pipeline_mode = #tpu.pipeline_mode<synchronous>, transform_indices = @transform_2, window_bounds = array<i64: 8, 1>}, {pipeline_mode = #tpu.pipeline_mode<synchronous>, transform_indices = @transform_3, window_bounds = array<i64: 8, 1>}, {pipeline_mode = #tpu.pipeline_mode<synchronous>, transform_indices = @transform_4, window_bounds = array<i64: 8, 8>}, {pipeline_mode = #tpu.pipeline_mode<synchronous>, transform_indices = @transform_5, window_bounds = array<i64: 8, 1>}, {pipeline_mode = #tpu.pipeline_mode<synchronous>, transform_indices = @transform_6, window_bounds = array<i64: 8, 1>}, {transform_indices = @transform_7, window_bounds = array<i64: 1, 8, 256>}]} {
    %c0 = arith.constant 0 : index
    %c0_0 = arith.constant 0 : index
    %c0_1 = arith.constant 0 : index
    %0 = vector.load %arg2[%c0, %c0_0, %c0_1] : memref<1x8x256xf32, #tpu.memory_space<vmem>>, vector<1x8x256xf32>
    %1 = vector.shape_cast %0 : vector<1x8x256xf32> to vector<8x256xf32>
    %c0_2 = arith.constant 0 : index
    %c0_3 = arith.constant 0 : index
    %2 = vector.load %arg3[%c0_2, %c0_3] : memref<8x8xf32, #tpu.memory_space<vmem>>, vector<8x8xf32>
    %3 = vector.extract_strided_slice %2 {offsets = [0, 0], sizes = [8, 1], strides = [1, 1]} : vector<8x8xf32> to vector<8x1xf32>
    %4 = vector.extract_strided_slice %1 {offsets = [0, 0], sizes = [1, 256], strides = [1, 1]} : vector<8x256xf32> to vector<1x256xf32>
    %5 = vector.broadcast %3 : vector<8x1xf32> to vector<8x256xf32>
    %6 = vector.broadcast %4 : vector<1x256xf32> to vector<8x256xf32>
    %7 = arith.mulf %5, %6 : vector<8x256xf32>
    %8 = vector.extract_strided_slice %2 {offsets = [0, 1], sizes = [8, 1], strides = [1, 1]} : vector<8x8xf32> to vector<8x1xf32>
    %9 = vector.extract_strided_slice %1 {offsets = [1, 0], sizes = [1, 256], strides = [1, 1]} : vector<8x256xf32> to vector<1x256xf32>
    %10 = vector.broadcast %8 : vector<8x1xf32> to vector<8x256xf32>
    %11 = vector.broadcast %9 : vector<1x256xf32> to vector<8x256xf32>
    %12 = arith.mulf %10, %11 : vector<8x256xf32>
    %13 = arith.addf %7, %12 : vector<8x256xf32>
    %14 = vector.extract_strided_slice %2 {offsets = [0, 2], sizes = [8, 1], strides = [1, 1]} : vector<8x8xf32> to vector<8x1xf32>
    %15 = vector.extract_strided_slice %1 {offsets = [2, 0], sizes = [1, 256], strides = [1, 1]} : vector<8x256xf32> to vector<1x256xf32>
    %16 = vector.broadcast %14 : vector<8x1xf32> to vector<8x256xf32>
    %17 = vector.broadcast %15 : vector<1x256xf32> to vector<8x256xf32>
    %18 = arith.mulf %16, %17 : vector<8x256xf32>
    %19 = arith.addf %13, %18 : vector<8x256xf32>
    %20 = vector.extract_strided_slice %2 {offsets = [0, 3], sizes = [8, 1], strides = [1, 1]} : vector<8x8xf32> to vector<8x1xf32>
    %21 = vector.extract_strided_slice %1 {offsets = [3, 0], sizes = [1, 256], strides = [1, 1]} : vector<8x256xf32> to vector<1x256xf32>
    %22 = vector.broadcast %20 : vector<8x1xf32> to vector<8x256xf32>
    %23 = vector.broadcast %21 : vector<1x256xf32> to vector<8x256xf32>
    %24 = arith.mulf %22, %23 : vector<8x256xf32>
    %25 = arith.addf %19, %24 : vector<8x256xf32>
    %26 = vector.extract_strided_slice %2 {offsets = [0, 4], sizes = [8, 1], strides = [1, 1]} : vector<8x8xf32> to vector<8x1xf32>
    %27 = vector.extract_strided_slice %1 {offsets = [4, 0], sizes = [1, 256], strides = [1, 1]} : vector<8x256xf32> to vector<1x256xf32>
    %28 = vector.broadcast %26 : vector<8x1xf32> to vector<8x256xf32>
    %29 = vector.broadcast %27 : vector<1x256xf32> to vector<8x256xf32>
    %30 = arith.mulf %28, %29 : vector<8x256xf32>
    %31 = arith.addf %25, %30 : vector<8x256xf32>
    %32 = vector.extract_strided_slice %2 {offsets = [0, 5], sizes = [8, 1], strides = [1, 1]} : vector<8x8xf32> to vector<8x1xf32>
    %33 = vector.extract_strided_slice %1 {offsets = [5, 0], sizes = [1, 256], strides = [1, 1]} : vector<8x256xf32> to vector<1x256xf32>
    %34 = vector.broadcast %32 : vector<8x1xf32> to vector<8x256xf32>
    %35 = vector.broadcast %33 : vector<1x256xf32> to vector<8x256xf32>
    %36 = arith.mulf %34, %35 : vector<8x256xf32>
    %37 = arith.addf %31, %36 : vector<8x256xf32>
    %38 = vector.extract_strided_slice %2 {offsets = [0, 6], sizes = [8, 1], strides = [1, 1]} : vector<8x8xf32> to vector<8x1xf32>
    %39 = vector.extract_strided_slice %1 {offsets = [6, 0], sizes = [1, 256], strides = [1, 1]} : vector<8x256xf32> to vector<1x256xf32>
    %40 = vector.broadcast %38 : vector<8x1xf32> to vector<8x256xf32>
    %41 = vector.broadcast %39 : vector<1x256xf32> to vector<8x256xf32>
    %42 = arith.mulf %40, %41 : vector<8x256xf32>
    %43 = arith.addf %37, %42 : vector<8x256xf32>
    %44 = vector.extract_strided_slice %2 {offsets = [0, 7], sizes = [8, 1], strides = [1, 1]} : vector<8x8xf32> to vector<8x1xf32>
    %45 = vector.extract_strided_slice %1 {offsets = [7, 0], sizes = [1, 256], strides = [1, 1]} : vector<8x256xf32> to vector<1x256xf32>
    %46 = vector.broadcast %44 : vector<8x1xf32> to vector<8x256xf32>
    %47 = vector.broadcast %45 : vector<1x256xf32> to vector<8x256xf32>
    %48 = arith.mulf %46, %47 : vector<8x256xf32>
    %49 = arith.addf %43, %48 : vector<8x256xf32>
    %c0_4 = arith.constant 0 : index
    %c0_5 = arith.constant 0 : index
    %50 = vector.load %arg4[%c0_4, %c0_5] : memref<8x1xf32, #tpu.memory_space<vmem>>, vector<8x1xf32>
    %51 = vector.broadcast %50 : vector<8x1xf32> to vector<8x256xf32>
    %52 = arith.mulf %49, %51 : vector<8x256xf32>
    %c0_6 = arith.constant 0 : index
    %c0_7 = arith.constant 0 : index
    %53 = vector.load %arg5[%c0_6, %c0_7] : memref<8x1xf32, #tpu.memory_space<vmem>>, vector<8x1xf32>
    %54 = vector.broadcast %53 : vector<8x1xf32> to vector<8x256xf32>
    %55 = arith.addf %52, %54 : vector<8x256xf32>
    %cst = arith.constant 0.000000e+00 : f32
    %56 = vector.broadcast %cst : f32 to vector<8x256xf32>
    %57 = arith.maximumf %55, %56 : vector<8x256xf32>
    %c0_8 = arith.constant 0 : index
    %c0_9 = arith.constant 0 : index
    %58 = vector.load %arg6[%c0_8, %c0_9] : memref<8x8xf32, #tpu.memory_space<vmem>>, vector<8x8xf32>
    %59 = vector.extract_strided_slice %58 {offsets = [0, 0], sizes = [8, 1], strides = [1, 1]} : vector<8x8xf32> to vector<8x1xf32>
    %60 = vector.extract_strided_slice %57 {offsets = [0, 0], sizes = [1, 256], strides = [1, 1]} : vector<8x256xf32> to vector<1x256xf32>
    %61 = vector.broadcast %59 : vector<8x1xf32> to vector<8x256xf32>
    %62 = vector.broadcast %60 : vector<1x256xf32> to vector<8x256xf32>
    %63 = arith.mulf %61, %62 : vector<8x256xf32>
    %64 = vector.extract_strided_slice %58 {offsets = [0, 1], sizes = [8, 1], strides = [1, 1]} : vector<8x8xf32> to vector<8x1xf32>
    %65 = vector.extract_strided_slice %57 {offsets = [1, 0], sizes = [1, 256], strides = [1, 1]} : vector<8x256xf32> to vector<1x256xf32>
    %66 = vector.broadcast %64 : vector<8x1xf32> to vector<8x256xf32>
    %67 = vector.broadcast %65 : vector<1x256xf32> to vector<8x256xf32>
    %68 = arith.mulf %66, %67 : vector<8x256xf32>
    %69 = arith.addf %63, %68 : vector<8x256xf32>
    %70 = vector.extract_strided_slice %58 {offsets = [0, 2], sizes = [8, 1], strides = [1, 1]} : vector<8x8xf32> to vector<8x1xf32>
    %71 = vector.extract_strided_slice %57 {offsets = [2, 0], sizes = [1, 256], strides = [1, 1]} : vector<8x256xf32> to vector<1x256xf32>
    %72 = vector.broadcast %70 : vector<8x1xf32> to vector<8x256xf32>
    %73 = vector.broadcast %71 : vector<1x256xf32> to vector<8x256xf32>
    %74 = arith.mulf %72, %73 : vector<8x256xf32>
    %75 = arith.addf %69, %74 : vector<8x256xf32>
    %76 = vector.extract_strided_slice %58 {offsets = [0, 3], sizes = [8, 1], strides = [1, 1]} : vector<8x8xf32> to vector<8x1xf32>
    %77 = vector.extract_strided_slice %57 {offsets = [3, 0], sizes = [1, 256], strides = [1, 1]} : vector<8x256xf32> to vector<1x256xf32>
    %78 = vector.broadcast %76 : vector<8x1xf32> to vector<8x256xf32>
    %79 = vector.broadcast %77 : vector<1x256xf32> to vector<8x256xf32>
    %80 = arith.mulf %78, %79 : vector<8x256xf32>
    %81 = arith.addf %75, %80 : vector<8x256xf32>
    %82 = vector.extract_strided_slice %58 {offsets = [0, 4], sizes = [8, 1], strides = [1, 1]} : vector<8x8xf32> to vector<8x1xf32>
    %83 = vector.extract_strided_slice %57 {offsets = [4, 0], sizes = [1, 256], strides = [1, 1]} : vector<8x256xf32> to vector<1x256xf32>
    %84 = vector.broadcast %82 : vector<8x1xf32> to vector<8x256xf32>
    %85 = vector.broadcast %83 : vector<1x256xf32> to vector<8x256xf32>
    %86 = arith.mulf %84, %85 : vector<8x256xf32>
    %87 = arith.addf %81, %86 : vector<8x256xf32>
    %88 = vector.extract_strided_slice %58 {offsets = [0, 5], sizes = [8, 1], strides = [1, 1]} : vector<8x8xf32> to vector<8x1xf32>
    %89 = vector.extract_strided_slice %57 {offsets = [5, 0], sizes = [1, 256], strides = [1, 1]} : vector<8x256xf32> to vector<1x256xf32>
    %90 = vector.broadcast %88 : vector<8x1xf32> to vector<8x256xf32>
    %91 = vector.broadcast %89 : vector<1x256xf32> to vector<8x256xf32>
    %92 = arith.mulf %90, %91 : vector<8x256xf32>
    %93 = arith.addf %87, %92 : vector<8x256xf32>
    %94 = vector.extract_strided_slice %58 {offsets = [0, 6], sizes = [8, 1], strides = [1, 1]} : vector<8x8xf32> to vector<8x1xf32>
    %95 = vector.extract_strided_slice %57 {offsets = [6, 0], sizes = [1, 256], strides = [1, 1]} : vector<8x256xf32> to vector<1x256xf32>
    %96 = vector.broadcast %94 : vector<8x1xf32> to vector<8x256xf32>
    %97 = vector.broadcast %95 : vector<1x256xf32> to vector<8x256xf32>
    %98 = arith.mulf %96, %97 : vector<8x256xf32>
    %99 = arith.addf %93, %98 : vector<8x256xf32>
    %100 = vector.extract_strided_slice %58 {offsets = [0, 7], sizes = [8, 1], strides = [1, 1]} : vector<8x8xf32> to vector<8x1xf32>
    %101 = vector.extract_strided_slice %57 {offsets = [7, 0], sizes = [1, 256], strides = [1, 1]} : vector<8x256xf32> to vector<1x256xf32>
    %102 = vector.broadcast %100 : vector<8x1xf32> to vector<8x256xf32>
    %103 = vector.broadcast %101 : vector<1x256xf32> to vector<8x256xf32>
    %104 = arith.mulf %102, %103 : vector<8x256xf32>
    %105 = arith.addf %99, %104 : vector<8x256xf32>
    %c0_10 = arith.constant 0 : index
    %c0_11 = arith.constant 0 : index
    %106 = vector.load %arg7[%c0_10, %c0_11] : memref<8x1xf32, #tpu.memory_space<vmem>>, vector<8x1xf32>
    %107 = vector.broadcast %106 : vector<8x1xf32> to vector<8x256xf32>
    %108 = arith.mulf %105, %107 : vector<8x256xf32>
    %c0_12 = arith.constant 0 : index
    %c0_13 = arith.constant 0 : index
    %109 = vector.load %arg8[%c0_12, %c0_13] : memref<8x1xf32, #tpu.memory_space<vmem>>, vector<8x1xf32>
    %110 = vector.broadcast %109 : vector<8x1xf32> to vector<8x256xf32>
    %111 = arith.addf %108, %110 : vector<8x256xf32>
    %c0_14 = arith.constant 0 : index
    %c0_15 = arith.constant 0 : index
    %c0_16 = arith.constant 0 : index
    %112 = vector.load %arg2[%c0_14, %c0_15, %c0_16] : memref<1x8x256xf32, #tpu.memory_space<vmem>>, vector<1x8x256xf32>
    %113 = vector.shape_cast %112 : vector<1x8x256xf32> to vector<8x256xf32>
    %114 = arith.addf %111, %113 : vector<8x256xf32>
    %cst_17 = arith.constant 0.000000e+00 : f32
    %115 = vector.broadcast %cst_17 : f32 to vector<8x256xf32>
    %116 = arith.maximumf %114, %115 : vector<8x256xf32>
    %c0_18 = arith.constant 0 : index
    %c0_19 = arith.constant 0 : index
    %c0_20 = arith.constant 0 : index
    %117 = vector.load %arg9[%c0_18, %c0_19, %c0_20] : memref<1x8x256xf32, #tpu.memory_space<vmem>>, vector<1x8x256xf32>
    %118 = vector.shape_cast %117 : vector<1x8x256xf32> to vector<8x256xf32>
    %119 = vector.shape_cast %116 : vector<8x256xf32> to vector<1x8x256xf32>
    tpu.vector_store %arg9[%c0_18, %c0_19, %c0_20], %119 {strides = array<i32>} : memref<1x8x256xf32, #tpu.memory_space<vmem>>, vector<1x8x256xf32>,
    return
  }
  func.func @transform_0(%arg0: i32, %arg1: i32) -> (i32, i32, i32) {
    %c0_i32 = arith.constant 0 : i32
    %c0_i32_0 = arith.constant 0 : i32
    return %arg0, %c0_i32, %arg1 : i32, i32, i32
  }
  func.func @transform_1(%arg0: i32, %arg1: i32) -> (i32, i32) {
    %c0_i32 = arith.constant 0 : i32
    %c0_i32_0 = arith.constant 0 : i32
    %c0_i32_1 = arith.constant 0 : i32
    return %c0_i32, %c0_i32_0 : i32, i32
  }
  func.func @transform_2(%arg0: i32, %arg1: i32) -> (i32, i32) {
    %c0_i32 = arith.constant 0 : i32
    %c0_i32_0 = arith.constant 0 : i32
    %c0_i32_1 = arith.constant 0 : i32
    return %c0_i32, %c0_i32_0 : i32, i32
  }
  func.func @transform_3(%arg0: i32, %arg1: i32) -> (i32, i32) {
    %c0_i32 = arith.constant 0 : i32
    %c0_i32_0 = arith.constant 0 : i32
    %c0_i32_1 = arith.constant 0 : i32
    return %c0_i32, %c0_i32_0 : i32, i32
  }
  func.func @transform_4(%arg0: i32, %arg1: i32) -> (i32, i32) {
    %c0_i32 = arith.constant 0 : i32
    %c0_i32_0 = arith.constant 0 : i32
    %c0_i32_1 = arith.constant 0 : i32
    return %c0_i32, %c0_i32_0 : i32, i32
  }
  func.func @transform_5(%arg0: i32, %arg1: i32) -> (i32, i32) {
    %c0_i32 = arith.constant 0 : i32
    %c0_i32_0 = arith.constant 0 : i32
    %c0_i32_1 = arith.constant 0 : i32
    return %c0_i32, %c0_i32_0 : i32, i32
  }
  func.func @transform_6(%arg0: i32, %arg1: i32) -> (i32, i32) {
    %c0_i32 = arith.constant 0 : i32
    %c0_i32_0 = arith.constant 0 : i32
    %c0_i32_1 = arith.constant 0 : i32
    return %c0_i32, %c0_i32_0 : i32, i32
  }
  func.func @transform_7(%arg0: i32, %arg1: i32) -> (i32, i32, i32) {
    %c0_i32 = arith.constant 0 : i32
    %c0_i32_0 = arith.constant 0 : i32
    return %arg0, %c0_i32, %arg1 : i32, i32, i32
  }
}

</mosaic_0001>

<bundles_post_ra>
// kernel: tpu_custom_call.1
= control target key start
LH: loop header
LB: loop body
LE: loop exit
PB: predicated region body
PF: predicated region fallthrough
CT: control target
= control target key end

     0   :  { %12 = vsyncpa [#allocation3], 0  ;;  %s1231_s0 = inlined_call_operand.vmem [shape: f32[2,8,256], index: 0, kind: input, shape index: {}]   ;;  %s1232_s1 = inlined_call_operand.hbm [shape: f32[8,8], index: 1, kind: input, shape index: {}]   ;;  %s1233_s2 = inlined_call_operand.vmem [shape: f32[8,1], index: 2, kind: input, shape index: {}]   ;;  %s1234_s3 = inlined_call_operand.vmem [shape: f32[8,1], index: 3, kind: input, shape index: {}]   ;;  %s1235_s4 = inlined_call_operand.vmem [shape: f32[8,8], index: 4, kind: input, shape index: {}]   ;;  %s1236_s5 = inlined_call_operand.vmem [shape: f32[8,1], index: 5, kind: input, shape index: {}]   ;;  %s1237_s6 = inlined_call_operand.vmem [shape: f32[8,1], index: 6, kind: input, shape index: {}]   ;;  %s1238_s7 = inlined_call_operand.hbm [shape: f32[2,8,256], index: 7, kind: output, shape index: {}]  }
   0x1   :  { %13 = vsyncpa [#allocation4], 0 }
   0x2   :  { %15 = vsyncpa [#allocation4 + $0x1], 0  ;;  %s996_s24 = smov 0   ;;  %s998_s25 = smov 0  }
   0x3   :  { %s1000_s26 = smov 0   ;;  %s1002_s27 = smov 0  }
   0x4   :  { %s1004_s28 = smov 0   ;;  %s1006_s29 = smov 0  }
   0x5 LB: > { %s724_s30 = sadd.s32 4294967295, %s944_s29   ;;  %s725_s8 = sadd.s32 4294967294, %s944_s29   ;;  %s944_s29 = sphi %s1006_s29, %s21_s29   ;;  %s940_s28 = sphi %s1004_s28, %s1256_s28   ;;  %s936_s27 = sphi %s1002_s27, %s1255_s27   ;;  %s932_s26 = sphi %s1000_s26, %s1254_s26   ;;  %s928_s25 = sphi %s998_s25, %s1253_s25   ;;  %s924_s24 = sphi %s996_s24, %s1252_s24  }
   0x6   : > { %s33_s9 = sadd.s32 1, %s940_s28  ;;  %s196_s10 = sadd.s32 1, %s932_s26 }
   0x7   : > { %p35_p0 = scmp.ge.s32.totalorder %s33_s9, 2  ;;  %p206_p1 = scmp.ne.s32.totalorder %s932_s26, %s928_s25 }
   0x8   : > { %p207_p2 = scmp.eq.s32.totalorder %s724_s30, 1  ;;  %p212_p3 = scmp.ne.s32.totalorder %s928_s25, %s924_s24 }
   0x9   : > { %s1258_s9 = smov (%p35_p0, %s33_s9), 0  ;;  %p213_p5 = scmp.eq.s32.totalorder %s725_s8, 1 }
   0xa   : > { %p1036_p4 = por %p207_p2, %p206_p1  ;;  %s191_s12 = ssub.s32 %s940_s28, %s1258_s9 }
   0xb   : > { %p726_p6 = scmp.ge.s32.totalorder %s944_s29, 1  ;;  %p194_p7 = scmp.eq.s32.totalorder %s191_s12, 0 }
   0xc   : > { %s1243_s11 = scalar_select %p1036_p4, 1, 0 }
   0xd   : > { %p1043_p8 = por %p213_p5, %p212_p3  ;;  %p220_p9 = scmp.lt.s32.totalorder %s944_s29, 3 }
   0xe   : > { %s1049_s14 = scalar_select %p194_p7, %s932_s26, %s196_s10  }
   0xf   : > { %s1244_s13 = scalar_select %p1043_p8, 1, 0 }
  0x10   : > { %p1051_p10 = pnand %p726_p6, %p220_p9  ;;  %p1055_p11 = scmp.eq.s32.totalorder %s724_s30, 0 }
  0x11   : > { %s946_s17 = smov [#allocation2]   ;;  %s834_s22 = scalar_lea.hbm %s1232_s1, 128 }
  0x12   : > { %s1245_s15 = scalar_select %p1051_p10, 1, 0 }
  0x13   : > { %s1246_s16 = scalar_select %p1055_p11, 1, 0 }
  0x14   : > { %p747_p12 = pneg %p1051_p10  ;;  %s233_s18 = sshll.u32 %s946_s17, 4  ;;  %s234_s18 = int_to_ptr.vmem [resolvable:$true] %s233_s18 }
  0x15   : > { %p835_p0 = scmp.ne.s32.totalorder %s1232_s1, %s834_s22  ;;  %p841_p5 = scmp.lt.u32.totalorder %s834_s22, %s1232_s1 }
  0x16   : > { %p1063_p13 = pnand %p1055_p11, %p747_p12 }
  0x18   : > { %p836_p1 = pneg %p1063_p13 }
  0x1a   : > { %p837_p2 = pnand %p836_p1, %p835_p0 }
  0x1c   : > { %p838_p3 = pneg %p837_p2 }
  0x1e   : > { %p843_p6 = pnand %p841_p5, %p838_p3 }
  0x20   : > { %846 = shalt.err (!%p843_p6)
}
  0x21   : > { %s847_s12 = scalar_lea.vmem %s234_s18, 128  ;;  %p855_p8 = scmp.lt.s32.totalorder %s234_s18, %s234_s18 }
  0x22   : > { %p848_p7 = scmp.ne.s32.totalorder %s234_s18, %s847_s12  ;;  %p856_p4 = scmp.lt.s32.totalorder %s847_s12, %s847_s12 }
  0x24   : > { %p850_p9 = pnand %p848_p7, %p836_p1  ;;  %p857_p11 = por %p856_p4, %p855_p8 }
  0x26   : > { %p851_p12 = pneg %p850_p9 }
  0x28   : > { %p858_p10 = pnand %p857_p11, %p851_p12 }
  0x2a   : > { %861 = shalt.err (!%p858_p10)
}
  0x2b   : > { %750 = dma.hbm_to_vmem [thread:$0]  (!%p1063_p13), %s1232_s1, 128, %s234_s18, [#allocation3]  }
  0x2c   : > { %p1248_p0 = scmp.ne.s32.totalorder %s1245_s15, 0 }
  0x2d   : > { %p1249_p2 = scmp.ne.s32.totalorder (!%p1248_p0), %s1246_s16, 0 }
  0x2e   : > { %274 = sbr.rel (%p1248_p0) target bundleno = 262 (0x106), region = 48 }
  0x35   : > { %915 = dma.done.wait (%p1249_p2), [#allocation3], 128  }
  0x36   : > { %917 = vsyncadd (%p1249_p2), [#allocation3], 4294967168  ;;  %v947_v0 = vmov 2   ;;  %v948_v1 = vmov 0   ;;  %v323_v2 = vld [vmem:[#allocation2] sm:$0xff]  ;;  %v949_v3 = vmov 3   ;;  %v329_v14 = vlaneseq }
  0x37   : > { %817 = vset.pattern.permute.xlu1 %v947_v0  ;;  %815 = vset.pattern.permute.xlu0 %v948_v1  ;;  %v950_v4 = vmov 1   ;;  %v951_v5 = vmov 4   ;;  %v952_v6 = vmov 5   ;;  %v451_v7 = vld [vmem:[%s1233_s2] sm:$0xff]  ;;  %v953_v8 = vmov 6   ;;  %p311_p4 = scmp.lt.s32.totalorder %s936_s27, 1 }
  0x38   : > { %356 = vperm.xlu1 %817, %v323_v2   ;;  %326 = vperm.xlu0 %815, %v323_v2   ;;  %v469_v9 = vld [vmem:[%s1235_s4] sm:$0xff]  ;;  %v954_v10 = vmov 7   ;;  %v330_v15 = vshrl.u32 %v329_v14, 7  ;;  %s307_s18 = sand.u32 1, %s928_s25   ;;  %s740_s21 = sshll.u32 %s936_s27, 8 }
  0x39   : > { %v459_v11 = vld [vmem:[%s1234_s3] sm:$0xff]  ;;  %s312_s12 = scalar_select %p311_p4, %s936_s27, 1 }
  0x3a   : > { %v597_v12 = vld [vmem:[%s1236_s5] sm:$0xff]  ;;  %v1109_v16 = vsub.s32 0, %v330_v15  ;;  %v1111_v17 = vsub.s32 1, %v330_v15  ;;  %v1117_v20 = vsub.s32 2, %v330_v15  ;;  %v1123_v25 = vsub.s32 3, %v330_v15  ;;  %s731_s19 = sshll.u32 %s307_s18, 4  ;;  %s1184_s10 = scalar_lea.hbm %s1238_s7, %s740_s21 }
  0x3b   : > { %v605_v13 = vld [vmem:[%s1237_s6] sm:$0xff]  ;;  %s739_s17 = sshll.u32 %s312_s12, 4  ;;  %v1129_v28 = vsub.s32 4, %v330_v15  ;;  %v1135_v35 = vsub.s32 5, %v330_v15  ;;  %v1149_v48 = vsub.s32 6, %v330_v15  ;;  %v1151_v59 = vsub.s32 7, %v330_v15 }
  0x3c   : > { %818 = vset.pattern.permute.xlu1 %v949_v3  ;;  %816 = vset.pattern.permute.xlu0 %v950_v4  ;;  %s318_s16 = scalar_lea.vmem %s1231_s0, %s739_s17  ;;  %s309_s22 = scalar_lea.vmem [#allocation5], %s731_s19 }
  0x3d   : > { %372 = vperm.xlu1 %818, %v323_v2   ;;  %340 = vperm.xlu0 %816, %v323_v2   ;;  %v1113_v18 = vld [vmem:[%s318_s16] sm:$0xff]  ;;  %v1115_v19 = vld [vmem:[%s318_s16 + $0x8] sm:$0xff]  ;;  %s636_s23 = sshll.u32 %s309_s22, 4  ;;  %s620_s27 = scalar_lea.sflag [#allocation4], %s307_s18  ;;  %s1186_s23 = int_to_ptr.vmem [resolvable:$true] %s636_s23 }
  0x3e   : > { %v332_v23 = vrot.slane %v1113_v18, %v1109_v16  ;;  %v336_v24 = vrot.slane %v1115_v19, %v1109_v16  ;;  %v346_v26 = vrot.slane %v1113_v18, %v1111_v17  ;;  %v350_v27 = vrot.slane %v1115_v19, %v1111_v17  ;;  %s862_s12 = scalar_lea.vmem %s1186_s23, 256  ;;  %p1250_p10 = scmp.ne.s32.totalorder %s1243_s11, 0 }
  0x3f   : > { %v362_v29 = vrot.slane %v1113_v18, %v1117_v20  ;;  %v366_v30 = vrot.slane %v1115_v19, %v1117_v20  ;;  %v378_v36 = vrot.slane %v1113_v18, %v1123_v25  ;;  %v382_v37 = vrot.slane %v1115_v19, %v1123_v25  ;;  %p863_p8 = scmp.ne.s32.totalorder %s1186_s23, %s862_s12  ;;  %s955_s17 = smov [#allocation5]  }
  0x40   : > { %v394_v40 = vrot.slane %v1113_v18, %v1129_v28  ;;  %v398_v41 = vrot.slane %v1115_v19, %v1129_v28  ;;  %v410_v46 = vrot.slane %v1113_v18, %v1135_v35  ;;  %v414_v47 = vrot.slane %v1115_v19, %v1135_v35  ;;  %s866_s20 = sshll.u32 %s955_s17, 4  ;;  %s867_s20 = int_to_ptr.vmem [resolvable:$false] %s866_s20 }
  0x41   : > { %819 = vset.pattern.permute.xlu1 %v951_v5  ;;  %820 = vset.pattern.permute.xlu0 %v952_v6  ;;  %v426_v62 = vrot.slane %v1113_v18, %v1149_v48  ;;  %v430_v63 = vrot.slane %v1115_v19, %v1149_v48  ;;  %p864_p11 = pnand %p863_p8, %p1250_p10  ;;  %s868_s15 = scalar_lea.vmem %s867_s20, 512 }
  0x42   : > { %388 = vperm.xlu1 %819, %v323_v2   ;;  %404 = vperm.xlu0 %820, %v323_v2   ;;  %p869_p1 = scmp.lt.s32.totalorder %s1186_s23, %s867_s20  ;;  %p870_p3 = scmp.lt.s32.totalorder %s868_s15, %s862_s12 }
  0x43   : > { %p865_p13 = pneg %p864_p11 }
  0x44   : > { %p871_p5 = por %p870_p3, %p869_p1 }
  0x46   : > { %821 = vset.pattern.permute.xlu1 %v953_v8  ;;  %823 = vset.pattern.permute.xlu0 %v948_v1  ;;  %p872_p6 = pnand %p871_p5, %p865_p13 }
  0x47   : > { %420 = vperm.xlu1 %821, %v323_v2   ;;  %454 = vperm.xlu0 %823, %v451_v7  }
  0x4b   : > { %822 = vset.pattern.permute.xlu1 %v954_v10  ;;  %825 = vset.pattern.permute.xlu0 %v950_v4  ;;  %v446_v4 = vrot.slane %v1115_v19, %v1151_v59 }
  0x4c   : > { %436 = vperm.xlu1 %822, %v323_v2   ;;  %486 = vperm.xlu0 %825, %v469_v9  }
  0x50   : > { %824 = vset.pattern.permute.xlu1 %v948_v1  ;;  %828 = vset.pattern.permute.xlu0 %v951_v5 }
  0x51   : > { %462 = vperm.xlu1 %824, %v459_v11   ;;  %534 = vperm.xlu0 %828, %v469_v9  }
  0x55   : > { %472 = vperm.xlu1 %824, %v469_v9   ;;  %831 = vset.pattern.permute.xlu0 %v954_v10 }
  0x56   : > { %582 = vperm.xlu0 %831, %v469_v9  }
  0x59   : > { %826 = vset.pattern.permute.xlu1 %v947_v0 }
  0x5a   : > { %502 = vperm.xlu1 %826, %v469_v9   ;;  %833 = vset.pattern.permute.xlu0 %v948_v1 }
  0x5e   : > { %827 = vset.pattern.permute.xlu1 %v949_v3  ;;  %v442_v3 = vrot.slane %v1113_v18, %v1151_v59 }
  0x5f   : > { %518 = vperm.xlu1 %827, %v469_v9  }
  0x63   : > { %829 = vset.pattern.permute.xlu1 %v952_v6 }
  0x64   : > { %550 = vperm.xlu1 %829, %v469_v9  }
  0x68   : > { %830 = vset.pattern.permute.xlu1 %v953_v8 }
  0x69   : > { %566 = vperm.xlu1 %830, %v469_v9  }
  0x6d   : > { %832 = vset.pattern.permute.xlu1 %v948_v1 }
  0x6e   : > { %600 = vperm.xlu1 %832, %v597_v12  }
  0x72   : > { %608 = vperm.xlu1 %832, %v605_v13  }
  0xb7   : > { %v357_v21 = vpop.permute.xlu1 %356  ;;  %v327_v22 = vpop.permute.xlu0 %326 }
  0xb8   : > { %v337_v31 = vmul.f32 %v332_v23, %v327_v22  ;;  %v338_v32 = vmul.f32 %v336_v24, %v327_v22  ;;  %v367_v42 = vmul.f32 %v362_v29, %v357_v21  ;;  %v368_v43 = vmul.f32 %v366_v30, %v357_v21 }
  0xbc   : > { %v373_v33 = vpop.permute.xlu1 %372  ;;  %v341_v34 = vpop.permute.xlu0 %340 }
  0xbd   : > { %v351_v38 = vmul.f32 %v346_v26, %v341_v34  ;;  %v352_v39 = vmul.f32 %v350_v27, %v341_v34  ;;  %v383_v49 = vmul.f32 %v378_v36, %v373_v33  ;;  %v384_v50 = vmul.f32 %v382_v37, %v373_v33 }
  0xbf   : > { %v353_v44 = vadd.f32 %v351_v38, %v337_v31  ;;  %v354_v45 = vadd.f32 %v352_v39, %v338_v32 }
  0xc1   : > { %v369_v51 = vadd.f32 %v367_v42, %v353_v44  ;;  %v370_v52 = vadd.f32 %v368_v43, %v354_v45  ;;  %v389_v53 = vpop.permute.xlu1 %388  ;;  %v405_v54 = vpop.permute.xlu0 %404 }
  0xc2   : > { %v399_v55 = vmul.f32 %v394_v40, %v389_v53  ;;  %v400_v56 = vmul.f32 %v398_v41, %v389_v53  ;;  %v415_v60 = vmul.f32 %v410_v46, %v405_v54  ;;  %v416_v61 = vmul.f32 %v414_v47, %v405_v54 }
  0xc3   : > { %v385_v57 = vadd.f32 %v383_v49, %v369_v51  ;;  %v386_v58 = vadd.f32 %v384_v50, %v370_v52 }
  0xc5   : > { %v401_v0 = vadd.f32 %v399_v55, %v385_v57  ;;  %v402_v1 = vadd.f32 %v400_v56, %v386_v58 }
  0xc6   : > { %v421_v2 = vpop.permute.xlu1 %420  ;;  %v455_v21 = vpop.permute.xlu0 %454 }
  0xc7   : > { %v417_v5 = vadd.f32 %v415_v60, %v401_v0  ;;  %v418_v6 = vadd.f32 %v416_v61, %v402_v1  ;;  %v431_v7 = vmul.f32 %v426_v62, %v421_v2  ;;  %v432_v8 = vmul.f32 %v430_v63, %v421_v2 }
  0xc9   : > { %v433_v10 = vadd.f32 %v431_v7, %v417_v5  ;;  %v434_v11 = vadd.f32 %v432_v8, %v418_v6 }
  0xcb   : > { %v437_v9 = vpop.permute.xlu1 %436  ;;  %v487_v37 = vpop.permute.xlu0 %486 }
  0xcc   : > { %v447_v12 = vmul.f32 %v442_v3, %v437_v9  ;;  %v448_v13 = vmul.f32 %v446_v4, %v437_v9 }
  0xce   : > { %v449_v14 = vadd.f32 %v447_v12, %v433_v10  ;;  %v450_v15 = vadd.f32 %v448_v13, %v434_v11 }
  0xd0   : > { %v457_v22 = vmul.f32 %v455_v21, %v449_v14  ;;  %v458_v23 = vmul.f32 %v455_v21, %v450_v15  ;;  %v463_v24 = vpop.permute.xlu1 %462 }
  0xd2   : > { %v465_v26 = vadd.f32 %v463_v24, %v457_v22  ;;  %v466_v27 = vadd.f32 %v463_v24, %v458_v23 }
  0xd4   : > { %v467_v29 = vmax.f32 %v465_v26, 0.0  ;;  %v468_v30 = vmax.f32 %v466_v27, 0.0  ;;  %v473_v31 = vpop.permute.xlu1 %472 }
  0xd6   : > { %v478_v32 = vrot.slane %v467_v29, %v1109_v16  ;;  %v482_v33 = vrot.slane %v468_v30, %v1109_v16  ;;  %v492_v34 = vrot.slane %v467_v29, %v1111_v17  ;;  %v496_v36 = vrot.slane %v468_v30, %v1111_v17 }
  0xd7   : > { %v508_v43 = vrot.slane %v467_v29, %v1117_v20  ;;  %v512_v44 = vrot.slane %v468_v30, %v1117_v20  ;;  %v524_v16 = vrot.slane %v467_v29, %v1123_v25  ;;  %v528_v50 = vrot.slane %v468_v30, %v1123_v25  ;;  %v535_v20 = vpop.permute.xlu0 %534 }
  0xd8   : > { %v483_v38 = vmul.f32 %v478_v32, %v473_v31  ;;  %v484_v39 = vmul.f32 %v482_v33, %v473_v31  ;;  %v497_v40 = vmul.f32 %v492_v34, %v487_v37  ;;  %v498_v41 = vmul.f32 %v496_v36, %v487_v37 }
  0xd9   : > { %v503_v42 = vpop.permute.xlu1 %502  ;;  %v540_v17 = vrot.slane %v467_v29, %v1129_v28  ;;  %v544_v51 = vrot.slane %v468_v30, %v1129_v28  ;;  %v556_v63 = vrot.slane %v467_v29, %v1135_v35  ;;  %v560_v25 = vrot.slane %v468_v30, %v1135_v35 }
  0xda   : > { %v499_v45 = vadd.f32 %v497_v40, %v483_v38  ;;  %v500_v46 = vadd.f32 %v498_v41, %v484_v39  ;;  %v513_v47 = vmul.f32 %v508_v43, %v503_v42  ;;  %v514_v49 = vmul.f32 %v512_v44, %v503_v42 }
  0xdb   : > { %v545_v60 = vmul.f32 %v540_v17, %v535_v20  ;;  %v546_v61 = vmul.f32 %v544_v51, %v535_v20  ;;  %v588_v3 = vrot.slane %v467_v29, %v1151_v59  ;;  %v592_v4 = vrot.slane %v468_v30, %v1151_v59  ;;  %v583_v7 = vpop.permute.xlu0 %582 }
  0xdc   : > { %v515_v53 = vadd.f32 %v513_v47, %v499_v45  ;;  %v516_v54 = vadd.f32 %v514_v49, %v500_v46  ;;  %v572_v5 = vrot.slane %v467_v29, %v1149_v48  ;;  %v576_v6 = vrot.slane %v468_v30, %v1149_v48 }
  0xdd   : > { %v593_v35 = vmul.f32 %v588_v3, %v583_v7  ;;  %v594_v13 = vmul.f32 %v592_v4, %v583_v7 }
  0xde   : > { %v519_v52 = vpop.permute.xlu1 %518 }
  0xdf   : > { %v529_v55 = vmul.f32 %v524_v16, %v519_v52  ;;  %v530_v56 = vmul.f32 %v528_v50, %v519_v52 }
  0xe1   : > { %v531_v57 = vadd.f32 %v529_v55, %v515_v53  ;;  %v532_v58 = vadd.f32 %v530_v56, %v516_v54 }
  0xe3   : > { %v551_v62 = vpop.permute.xlu1 %550  ;;  %v547_v0 = vadd.f32 %v545_v60, %v531_v57  ;;  %v548_v1 = vadd.f32 %v546_v61, %v532_v58 }
  0xe4   : > { %v561_v2 = vmul.f32 %v556_v63, %v551_v62  ;;  %v562_v28 = vmul.f32 %v560_v25, %v551_v62 }
  0xe6   : > { %v563_v9 = vadd.f32 %v561_v2, %v547_v0  ;;  %v564_v10 = vadd.f32 %v562_v28, %v548_v1 }
  0xe8   : > { %v567_v8 = vpop.permute.xlu1 %566 }
  0xe9   : > { %v577_v11 = vmul.f32 %v572_v5, %v567_v8  ;;  %v578_v12 = vmul.f32 %v576_v6, %v567_v8 }
  0xeb   : > { %v579_v14 = vadd.f32 %v577_v11, %v563_v9  ;;  %v580_v15 = vadd.f32 %v578_v12, %v564_v10 }
  0xed   : > { %v601_v21 = vpop.permute.xlu1 %600  ;;  %v595_v22 = vadd.f32 %v593_v35, %v579_v14  ;;  %v596_v23 = vadd.f32 %v594_v13, %v580_v15 }
  0xef   : > { %v603_v59 = vmul.f32 %v601_v21, %v595_v22  ;;  %v604_v24 = vmul.f32 %v601_v21, %v596_v23 }
  0xf1   : > { %v609_v26 = vpop.permute.xlu1 %608 }
  0xf2   : > { %v611_v48 = vadd.f32 %v609_v26, %v603_v59  ;;  %v612_v27 = vadd.f32 %v609_v26, %v604_v24 }
  0xf4   : > { %v613_v29 = vadd.f32 %v611_v48, %v1113_v18  ;;  %v614_v30 = vadd.f32 %v612_v27, %v1115_v19 }
  0xf6   : > { %v615_v31 = vmax.f32 %v613_v29, 0.0  ;;  %v616_v32 = vmax.f32 %v614_v30, 0.0 }
  0xf8   : > { %617 = vst [vmem:[%s309_s22] sm:$0xff] %v615_v31  ;;  %618 = vst [vmem:[%s309_s22 + $0x8] sm:$0xff] %v616_v32 }
  0xf9   : > { %875 = shalt.err (!%p872_p6)
}
  0xfa   : > { %s876_s16 = scalar_lea.hbm %s1184_s10, 256  ;;  %s880_s21 = scalar_lea.hbm %s1238_s7, 512 }
  0xfb   : > { %p877_p7 = scmp.ne.s32.totalorder %s1184_s10, %s876_s16  ;;  %p881_p0 = scmp.lt.u32.totalorder %s1184_s10, %s1238_s7 }
  0xfc   : > { %p882_p2 = scmp.lt.u32.totalorder %s880_s21, %s876_s16  ;;  %p884_p8 = scmp.lt.u32.totalorder %s876_s16, %s1184_s10 }
  0xfd   : > { %p878_p9 = pnand %p877_p7, %p1250_p10 }
  0xfe   : > { %p883_p4 = por %p882_p2, %p881_p0 }
  0xff   : > { %p879_p12 = pneg %p878_p9 }
 0x100   : > { %p885_p11 = por %p884_p8, %p883_p4 }
 0x102   : > { %p886_p13 = pnand %p885_p11, %p879_p12 }
 0x104   : > { %889 = shalt.err (!%p886_p13)
}
 0x105   : > { %745 = dma.vmem_to_hbm [thread:$0]  (%p1250_p10), %s1186_s23, 256, %s1184_s10, %s620_s27  }
 0x106 PF: > { %p757_p1 = scmp.ge.s32.totalorder %s944_s29, 2  ;;  %s648_s8 = sand.u32 1, %s924_s24  }
 0x107   : > { %p1251_p3 = scmp.ne.s32.totalorder %s1244_s13, 0  ;;  %s649_s12 = scalar_lea.sflag [#allocation4], %s648_s8 }
 0x109   : > { %p752_p5 = pnand %p757_p1, %p1251_p3 }
 0x10b   : > { %919 = dma.done.wait (!%p752_p5), %s649_s12, 256  }
 0x10c   : > { %921 = vsyncadd (!%p752_p5), %s649_s12, 4294967040  ;;  %s21_s29 = sadd.s32 1, %s944_s29   ;;  %s1252_s24 = smov %s928_s25 }
 0x10d   : > { %p18_p6 = scmp.ge.s32.totalorder %s21_s29, 4   ;;  %s1253_s25 = smov %s932_s26 }
 0x10e   : > { %s1254_s26 = smov %s1049_s14  ;;  %s1255_s27 = smov %s940_s28 }
 0x10f   : > { %s1256_s28 = smov %s1258_s9  ;;  %20 = sbr.rel (!%p18_p6) target bundleno = 5 (0x5), region = 88 }
 0x116   :  { %654 = vsyncpa [#allocation3], 1 }
 0x117   :  { %656 = vsyncpa [#allocation3 + $0x1], 1 }
 0x118   :  { %657 = vsyncpa [#allocation4], 1 }
 0x119   :  { %659 = vsyncpa [#allocation4 + $0x1], 1 }

</bundles_post_ra>
